<compile_context>
chip_gen: v7x
topology: tpu7x:2x2x1
jax: 0.10.0
libtpu: 0.0.40
codegen_flags: <defaults>
</compile_context>

<pallas_src>
import functools

import jax
import jax.numpy as jnp
from jax import lax
from jax.experimental import pallas as pl
from jax.experimental.pallas import tpu as pltpu

# Finite "minus infinity": exp() underflows to 0, avoids inf-inf NaNs.
_NEG_BIG = -1e30


def _round_up(x: int, m: int) -> int:
    return (x + m - 1) // m * m


def _infonce_kernel(x1_ref, x2_ref, out_ref, m_ref, l_ref, d_ref, *,
                    inv_temperature: float, num_valid: int, block_rows: int):
    i = pl.program_id(0)  # query (row) tile  -- "parallel"
    j = pl.program_id(1)  # key tile          -- reduction axis, "arbitrary"

    @pl.when(j == 0)
    def _init():
        m_ref[...] = jnp.full(m_ref.shape, _NEG_BIG, jnp.float32)
        l_ref[...] = jnp.zeros(l_ref.shape, jnp.float32)
        d_ref[...] = jnp.full(d_ref.shape, _NEG_BIG, jnp.float32)

    x1 = x1_ref[...]  # (tb, D) queries for row tile i, native dtype
    x2 = x2_ref[...]  # (tb, D) keys    for key tile j, native dtype

    # sim_t[k, q] = <x2[k], x1[q]>: keys on sublanes, queries on lanes.
    sim_t = lax.dot_general(x2, x1, (((1,), (1,)), ((), ())),
                            preferred_element_type=jnp.float32)
    logits = sim_t * inv_temperature  # (tb, tb) f32

    # Mask zero-padded keys beyond the true batch size.
    key_idx = j * block_rows + lax.broadcasted_iota(jnp.int32, logits.shape, 0)
    logits = jnp.where(key_idx < num_valid, logits, _NEG_BIG)

    # Online logsumexp over key tiles (per query column).
    m_prev = m_ref[...]                                                 # (1, tb)
    m_new = jnp.maximum(m_prev, jnp.max(logits, axis=0, keepdims=True))
    alpha = jnp.exp(m_prev - m_new)
    l_ref[...] = alpha * l_ref[...] + jnp.sum(jnp.exp(logits - m_new),
                                              axis=0, keepdims=True)
    m_ref[...] = m_new

    # Positive-pair logit: the global diagonal lives only in key tile j == i.
    @pl.when(j == i)
    def _diag():
        q_idx = i * block_rows + lax.broadcasted_iota(jnp.int32,
                                                      logits.shape, 1)
        d_ref[...] = jnp.sum(jnp.where(key_idx == q_idx, logits, 0.0),
                             axis=0, keepdims=True)

    @pl.when(j == pl.num_programs(1) - 1)
    def _finalize():
        # Stable form of -log(exp(diag) / sum(exp(row))).
        out_ref[...] = m_ref[...] + jnp.log(l_ref[...]) - d_ref[...]


def batch_info_nce_loss(batch_output1: jax.Array,
                        batch_output2: jax.Array,
                        temperature: float = 0.05,
                        block_rows: int | None = None) -> jax.Array:
    """Pallas-backed BatchInfoNCELoss forward. Returns a scalar float32 loss."""
    assert batch_output1.shape == batch_output2.shape
    assert batch_output1.ndim == 2
    B, D = batch_output1.shape

    if block_rows is None:
        # 256-aligned tiles for v6e/v7x MXU geometry (also a 128-multiple for
        # v5e); small batches collapse to one 8-aligned tile.
        block_rows = 256 if B >= 256 else _round_up(B, 8)
    tb = block_rows
    b_pad = _round_up(B, tb)

    x1, x2 = batch_output1, batch_output2
    if b_pad != B:
        x1 = jnp.pad(x1, ((0, b_pad - B), (0, 0)))
        x2 = jnp.pad(x2, ((0, b_pad - B), (0, 0)))

    n_tiles = b_pad // tb

    kernel = functools.partial(
        _infonce_kernel,
        inv_temperature=float(1.0 / temperature),
        num_valid=B,
        block_rows=tb)

    per_row = pl.pallas_call(
        kernel,
        out_shape=jax.ShapeDtypeStruct((1, b_pad), jnp.float32),
        grid_spec=pltpu.PrefetchScalarGridSpec(
            num_scalar_prefetch=0,
            grid=(n_tiles, n_tiles),
            in_specs=[
                pl.BlockSpec((tb, D), lambda i, j: (i, 0)),  # queries: row tile
                pl.BlockSpec((tb, D), lambda i, j: (j, 0)),  # keys:    key tile
            ],
            out_specs=pl.BlockSpec((1, tb), lambda i, j: (0, i)),
            scratch_shapes=[
                pltpu.VMEM((1, tb), jnp.float32),  # running max
                pltpu.VMEM((1, tb), jnp.float32),  # running sum of exp
                pltpu.VMEM((1, tb), jnp.float32),  # positive-pair logit
            ],
        ),
        compiler_params=pltpu.CompilerParams(
            dimension_semantics=("parallel", "arbitrary"),
            vmem_limit_bytes=32 * 1024 * 1024),
    )(x1, x2)

    # Drop padded query rows, reduce to the scalar loss in plain JAX.
    return jnp.mean(per_row[0, :B])


def _reference_loss(x1, x2, temperature=0.05):
    logits = (x1.astype(jnp.float32) @ x2.astype(jnp.float32).T) / temperature
    numerator = jnp.exp(jnp.diag(logits))[:, None]
    denominator = jnp.sum(jnp.exp(logits), axis=1, keepdims=True)
    return jnp.mean(-jnp.log(numerator / denominator))


if __name__ == "__main__":
    key = jax.random.PRNGKey(0)
    k1, k2 = jax.random.split(key)

    # Small test matching the module's expected inputs (batch of embeddings).
    B, D = 8, 32
    x1 = jax.random.normal(k1, (B, D), dtype=jnp.float32)
    x2 = jax.random.normal(k2, (B, D), dtype=jnp.float32)
    x1 = x1 / jnp.linalg.norm(x1, axis=1, keepdims=True)
    x2 = x2 / jnp.linalg.norm(x2, axis=1, keepdims=True)

    loss = batch_info_nce_loss(x1, x2, temperature=0.05)
    jax.block_until_ready(loss)
    ref = _reference_loss(x1, x2, temperature=0.05)
    assert jnp.allclose(loss, ref, rtol=1e-4, atol=1e-4), (loss, ref)

    # Multi-tile path: B not a tile multiple; exercises key masking, the
    # j == i diagonal tile, and the online logsumexp across key tiles.
    k3, k4 = jax.random.split(k2)
    B2, D2 = 300, 64
    y1 = jax.random.normal(k3, (B2, D2), dtype=jnp.float32)
    y2 = jax.random.normal(k4, (B2, D2), dtype=jnp.float32)
    y1 = y1 / jnp.linalg.norm(y1, axis=1, keepdims=True)
    y2 = y2 / jnp.linalg.norm(y2, axis=1, keepdims=True)

    loss2 = batch_info_nce_loss(y1, y2, temperature=0.05)
    jax.block_until_ready(loss2)
    ref2 = _reference_loss(y1, y2, temperature=0.05)
    assert jnp.allclose(loss2, ref2, rtol=5e-4, atol=5e-4), (loss2, ref2)

    print("KERNEL_OK")
</pallas_src>

<mosaic_0001>
module attributes {stable_mosaic.version = 11 : i64} {
  func.func @_infonce_kernel(%arg0: i32, %arg1: i32, %arg2: memref<8x32xf32, #tpu.memory_space<vmem>>, %arg3: memref<8x32xf32, #tpu.memory_space<vmem>>, %arg4: memref<1x8xf32, #tpu.memory_space<vmem>>, %arg5: memref<1x8xf32, #tpu.memory_space<vmem>>, %arg6: memref<1x8xf32, #tpu.memory_space<vmem>>, %arg7: memref<1x8xf32, #tpu.memory_space<vmem>>) attributes {dimension_semantics = [#tpu.dimension_semantics<parallel>, #tpu.dimension_semantics<arbitrary>], iteration_bounds = array<i64: 1, 1>, scalar_prefetch = 0 : i64, scratch_operands = 3 : i64, tpu.core_type = #tpu.core_type<tc>, window_params = [{transform_indices = @transform_0, window_bounds = array<i64: 8, 32>}, {transform_indices = @transform_1, window_bounds = array<i64: 8, 32>}, {transform_indices = @transform_2, window_bounds = array<i64: 1, 8>}]} {
    %c0_i32 = arith.constant 0 : i32
    %0 = arith.cmpi eq, %arg1, %c0_i32 : i32
    %1 = arith.extui %0 : i1 to i32
    %c0_i32_0 = arith.constant 0 : i32
    %2 = arith.cmpi ne, %1, %c0_i32_0 : i32
    scf.if %2 {
      %cst_20 = arith.constant -1.000000e+30 : f32
      %38 = vector.broadcast %cst_20 : f32 to vector<1x8xf32>
      %c0_21 = arith.constant 0 : index
      %c0_22 = arith.constant 0 : index
      %39 = vector.load %arg5[%c0_21, %c0_22] : memref<1x8xf32, #tpu.memory_space<vmem>>, vector<1x8xf32>
      tpu.vector_store %arg5[%c0_21, %c0_22], %38 {strides = array<i32>} : memref<1x8xf32, #tpu.memory_space<vmem>>, vector<1x8xf32>,
      %cst_23 = arith.constant 0.000000e+00 : f32
      %40 = vector.broadcast %cst_23 : f32 to vector<1x8xf32>
      %c0_24 = arith.constant 0 : index
      %c0_25 = arith.constant 0 : index
      %41 = vector.load %arg6[%c0_24, %c0_25] : memref<1x8xf32, #tpu.memory_space<vmem>>, vector<1x8xf32>
      tpu.vector_store %arg6[%c0_24, %c0_25], %40 {strides = array<i32>} : memref<1x8xf32, #tpu.memory_space<vmem>>, vector<1x8xf32>,
      %cst_26 = arith.constant -1.000000e+30 : f32
      %42 = vector.broadcast %cst_26 : f32 to vector<1x8xf32>
      %c0_27 = arith.constant 0 : index
      %c0_28 = arith.constant 0 : index
      %43 = vector.load %arg7[%c0_27, %c0_28] : memref<1x8xf32, #tpu.memory_space<vmem>>, vector<1x8xf32>
      tpu.vector_store %arg7[%c0_27, %c0_28], %42 {strides = array<i32>} : memref<1x8xf32, #tpu.memory_space<vmem>>, vector<1x8xf32>,
    } else {
    }
    %c0 = arith.constant 0 : index
    %c0_1 = arith.constant 0 : index
    %3 = vector.load %arg2[%c0, %c0_1] : memref<8x32xf32, #tpu.memory_space<vmem>>, vector<8x32xf32>
    %c0_2 = arith.constant 0 : index
    %c0_3 = arith.constant 0 : index
    %4 = vector.load %arg3[%c0_2, %c0_3] : memref<8x32xf32, #tpu.memory_space<vmem>>, vector<8x32xf32>
    %cst = arith.constant dense<0.000000e+00> : vector<8x8xf32>
    %5 = tpu.matmul %4, %3, %cst {dimension_numbers = #tpu.dot_dimension_numbers<[1], [1], [0], [0], [0, 0, 1, 0], [], []>} : vector<8x32xf32>, vector<8x32xf32>, vector<8x8xf32> -> vector<8x8xf32>
    %cst_4 = arith.constant 2.000000e+01 : f32
    %6 = vector.broadcast %cst_4 : f32 to vector<8x8xf32>
    %7 = arith.mulf %5, %6 : vector<8x8xf32>
    %c8_i32 = arith.constant 8 : i32
    %8 = arith.muli %arg1, %c8_i32 : i32
    %9 = tpu.iota {dimensions = array<i32: 0>} : vector<8x8xi32>
    %10 = vector.broadcast %8 : i32 to vector<8x8xi32>
    %11 = arith.addi %10, %9 : vector<8x8xi32>
    %c8_i32_5 = arith.constant 8 : i32
    %12 = vector.broadcast %c8_i32_5 : i32 to vector<8x8xi32>
    %13 = arith.cmpi slt, %11, %12 : vector<8x8xi32>
    %cst_6 = arith.constant -1.000000e+30 : f32
    %14 = vector.broadcast %cst_6 : f32 to vector<8x8xf32>
    %15 = arith.select %13, %7, %14 : vector<8x8xi1>, vector<8x8xf32>
    %c0_7 = arith.constant 0 : index
    %c0_8 = arith.constant 0 : index
    %16 = vector.load %arg5[%c0_7, %c0_8] : memref<1x8xf32, #tpu.memory_space<vmem>>, vector<1x8xf32>
    %cst_9 = arith.constant dense<0xFF800000> : vector<8xf32>
    %17 = vector.multi_reduction <maximumf>, %15, %cst_9 [0] : vector<8x8xf32> to vector<8xf32>
    %18 = vector.shape_cast %17 : vector<8xf32> to vector<1x8xf32>
    %19 = arith.maximumf %16, %18 : vector<1x8xf32>
    %20 = arith.subf %16, %19 : vector<1x8xf32>
    %21 = math.exp %20 : vector<1x8xf32>
    %c0_10 = arith.constant 0 : index
    %c0_11 = arith.constant 0 : index
    %22 = vector.load %arg6[%c0_10, %c0_11] : memref<1x8xf32, #tpu.memory_space<vmem>>, vector<1x8xf32>
    %23 = arith.mulf %21, %22 : vector<1x8xf32>
    %24 = vector.broadcast %19 : vector<1x8xf32> to vector<8x8xf32>
    %25 = arith.subf %15, %24 : vector<8x8xf32>
    %26 = math.exp %25 : vector<8x8xf32>
    %cst_12 = arith.constant dense<0.000000e+00> : vector<8xf32>
    %27 = vector.multi_reduction <add>, %26, %cst_12 [0] : vector<8x8xf32> to vector<8xf32>
    %28 = vector.shape_cast %27 : vector<8xf32> to vector<1x8xf32>
    %29 = arith.addf %23, %28 : vector<1x8xf32>
    %c0_13 = arith.constant 0 : index
    %c0_14 = arith.constant 0 : index
    %30 = vector.load %arg6[%c0_13, %c0_14] : memref<1x8xf32, #tpu.memory_space<vmem>>, vector<1x8xf32>
    tpu.vector_store %arg6[%c0_13, %c0_14], %29 {strides = array<i32>} : memref<1x8xf32, #tpu.memory_space<vmem>>, vector<1x8xf32>,
    %c0_15 = arith.constant 0 : index
    %c0_16 = arith.constant 0 : index
    %31 = vector.load %arg5[%c0_15, %c0_16] : memref<1x8xf32, #tpu.memory_space<vmem>>, vector<1x8xf32>
    tpu.vector_store %arg5[%c0_15, %c0_16], %19 {strides = array<i32>} : memref<1x8xf32, #tpu.memory_space<vmem>>, vector<1x8xf32>,
    %32 = arith.cmpi eq, %arg1, %arg0 : i32
    %33 = arith.extui %32 : i1 to i32
    %c0_i32_17 = arith.constant 0 : i32
    %34 = arith.cmpi ne, %33, %c0_i32_17 : i32
    scf.if %34 {
      %c8_i32_20 = arith.constant 8 : i32
      %38 = arith.muli %arg0, %c8_i32_20 : i32
      %39 = tpu.iota {dimensions = array<i32: 1>} : vector<8x8xi32>
      %40 = vector.broadcast %38 : i32 to vector<8x8xi32>
      %41 = arith.addi %40, %39 : vector<8x8xi32>
      %42 = arith.cmpi eq, %11, %41 : vector<8x8xi32>
      %cst_21 = arith.constant 0.000000e+00 : f32
      %43 = vector.broadcast %cst_21 : f32 to vector<8x8xf32>
      %44 = arith.select %42, %15, %43 : vector<8x8xi1>, vector<8x8xf32>
      %cst_22 = arith.constant dense<0.000000e+00> : vector<8xf32>
      %45 = vector.multi_reduction <add>, %44, %cst_22 [0] : vector<8x8xf32> to vector<8xf32>
      %46 = vector.shape_cast %45 : vector<8xf32> to vector<1x8xf32>
      %c0_23 = arith.constant 0 : index
      %c0_24 = arith.constant 0 : index
      %47 = vector.load %arg7[%c0_23, %c0_24] : memref<1x8xf32, #tpu.memory_space<vmem>>, vector<1x8xf32>
      tpu.vector_store %arg7[%c0_23, %c0_24], %46 {strides = array<i32>} : memref<1x8xf32, #tpu.memory_space<vmem>>, vector<1x8xf32>,
    } else {
    }
    %c0_i32_18 = arith.constant 0 : i32
    %35 = arith.cmpi eq, %arg1, %c0_i32_18 : i32
    %36 = arith.extui %35 : i1 to i32
    %c0_i32_19 = arith.constant 0 : i32
    %37 = arith.cmpi ne, %36, %c0_i32_19 : i32
    scf.if %37 {
      %c0_20 = arith.constant 0 : index
      %c0_21 = arith.constant 0 : index
      %38 = vector.load %arg5[%c0_20, %c0_21] : memref<1x8xf32, #tpu.memory_space<vmem>>, vector<1x8xf32>
      %c0_22 = arith.constant 0 : index
      %c0_23 = arith.constant 0 : index
      %39 = vector.load %arg6[%c0_22, %c0_23] : memref<1x8xf32, #tpu.memory_space<vmem>>, vector<1x8xf32>
      %40 = math.log %39 : vector<1x8xf32>
      %41 = arith.addf %38, %40 : vector<1x8xf32>
      %c0_24 = arith.constant 0 : index
      %c0_25 = arith.constant 0 : index
      %42 = vector.load %arg7[%c0_24, %c0_25] : memref<1x8xf32, #tpu.memory_space<vmem>>, vector<1x8xf32>
      %43 = arith.subf %41, %42 : vector<1x8xf32>
      %c0_26 = arith.constant 0 : index
      %c0_27 = arith.constant 0 : index
      %44 = vector.load %arg4[%c0_26, %c0_27] : memref<1x8xf32, #tpu.memory_space<vmem>>, vector<1x8xf32>
      tpu.vector_store %arg4[%c0_26, %c0_27], %43 {strides = array<i32>} : memref<1x8xf32, #tpu.memory_space<vmem>>, vector<1x8xf32>,
    } else {
    }
    return
  }
  func.func @transform_0(%arg0: i32, %arg1: i32) -> (i32, i32) {
    %c0_i32 = arith.constant 0 : i32
    %c0_i32_0 = arith.constant 0 : i32
    return %arg0, %c0_i32 : i32, i32
  }
  func.func @transform_1(%arg0: i32, %arg1: i32) -> (i32, i32) {
    %c0_i32 = arith.constant 0 : i32
    %c0_i32_0 = arith.constant 0 : i32
    return %arg1, %c0_i32 : i32, i32
  }
  func.func @transform_2(%arg0: i32, %arg1: i32) -> (i32, i32) {
    %c0_i32 = arith.constant 0 : i32
    %c0_i32_0 = arith.constant 0 : i32
    return %c0_i32, %arg0 : i32, i32
  }
}

</mosaic_0001>

<bundles_post_ra>
// kernel: tpu_custom_call.1
= control target key start
LH: loop header
LB: loop body
LE: loop exit
PB: predicated region body
PF: predicated region fallthrough
CT: control target
= control target key end

     0   :  { %7 = vsyncpa [#allocation6], 0  ;;  %s372_s0 = inlined_call_operand.hbm [shape: f32[8,32], index: 0, kind: input, shape index: {}]   ;;  %s373_s1 = inlined_call_operand.hbm [shape: f32[8,32], index: 1, kind: input, shape index: {}]   ;;  %s374_s2 = inlined_call_operand.hbm [shape: f32[1,8], index: 2, kind: output, shape index: {}]  }
   0x1   :  { %8 = vsyncpa [#allocation9], 0 }
   0x2   :  { %9 = vsyncpa [#allocation7], 0  ;;  %s305_s9 = smov [#allocation5]   ;;  %s306_s11 = smov [#allocation8]  }
   0x3   :  { %s16_s10 = sshll.u32 %s305_s9, 4  ;;  %s26_s12 = sshll.u32 %s306_s11, 4  ;;  %s17_s10 = int_to_ptr.vmem [resolvable:$true] %s16_s10  ;;  %s27_s12 = int_to_ptr.vmem [resolvable:$true] %s26_s12 }
   0x4   :  { %s233_s15 = scalar_lea.hbm %s372_s0, 128 }
   0x5   :  { %p234_p0 = scmp.ne.s32.totalorder %s372_s0, %s233_s15  ;;  %p237_p1 = scmp.lt.u32.totalorder %s233_s15, %s372_s0 }
   0x7   :  { %p239_p2 = pnand %p237_p1, %p234_p0 }
   0x9   :  { %242 = shalt.err (!%p239_p2)
}
   0xa   :  { %s243_s20 = scalar_lea.vmem %s17_s10, 128  ;;  %p248_p4 = scmp.lt.s32.totalorder %s17_s10, %s17_s10 }
   0xb   :  { %p244_p3 = scmp.ne.s32.totalorder %s17_s10, %s243_s20  ;;  %p249_p5 = scmp.lt.s32.totalorder %s243_s20, %s243_s20 }
   0xd   :  { %p250_p6 = por %p249_p5, %p248_p4 }
   0xf   :  { %p251_p7 = pnand %p250_p6, %p244_p3 }
  0x11   :  { %254 = shalt.err (!%p251_p7)
}
  0x12   :  { %19 = dma.hbm_to_vmem [thread:$0]  %s372_s0, 128, %s17_s10, [#allocation6]  }
  0x13   :  { %s255_s25 = scalar_lea.hbm %s373_s1, 128 }
  0x14   :  { %p256_p8 = scmp.ne.s32.totalorder %s373_s1, %s255_s25  ;;  %p259_p9 = scmp.lt.u32.totalorder %s255_s25, %s373_s1 }
  0x16   :  { %p261_p10 = pnand %p259_p9, %p256_p8 }
  0x18   :  { %264 = shalt.err (!%p261_p10)
}
  0x19   :  { %s265_s30 = scalar_lea.vmem %s27_s12, 128  ;;  %p270_p12 = scmp.lt.s32.totalorder %s27_s12, %s27_s12 }
  0x1a   :  { %p266_p11 = scmp.ne.s32.totalorder %s27_s12, %s265_s30  ;;  %p271_p13 = scmp.lt.s32.totalorder %s265_s30, %s265_s30 }
  0x1c   :  { %p272_p0 = por %p271_p13, %p270_p12 }
  0x1e   :  { %p273_p1 = pnand %p272_p0, %p266_p11 }
  0x20   :  { %276 = shalt.err (!%p273_p1)
}
  0x21   :  { %29 = dma.hbm_to_vmem [thread:$0]  %s373_s1, 128, %s27_s12, [#allocation9]  }
  0x22   :  { %299 = dma.done.wait [#allocation6], 128  }
  0x23   :  { %300 = vsyncadd [#allocation6], 4294967168 }
  0x24   :  { %301 = dma.done.wait [#allocation9], 128  }
  0x25   :  { %302 = vsyncadd [#allocation9], 4294967168  ;;  %vm40_vm0 = vcmask 57344   ;;  %v307_v0 = vmov 0.0   ;;  %vm308_vm1 = vmmov 0   ;;  %vm46_vm2 = vcmask 261120  }
  0x26   :  { %42 = vst.msk [vmem:[#allocation3] sm:$0x1] %vm40_vm0, %v307_v0  ;;  %216 = vmatprep.subr.mxu0 %v307_v0  ;;  %218 = vmatprep.mubr.msk.f32.mxu0 %vm308_vm1, %v307_v0  ;;  %v309_v1 = vmov -1e+30   ;;  %v44_v2 = vld [vmem:[#allocation5] sm:$0xff]  ;;  %v45_v3 = vld [vmem:[#allocation8] sm:$0xff]  ;;  %v125_v4 = vlaneseq }
  0x27   :  { %41 = vst.msk [vmem:[#allocation2] sm:$0x1] %vm40_vm0, %v309_v1  ;;  %43 = vst.msk [vmem:[#allocation4] sm:$0x1] %vm40_vm0, %v309_v1  ;;  %217 = vmatpush3.xpose.msk.msra.mxu0 %vm46_vm2, %v44_v2  ;;  %vm132_vm3 = vcmask 64512   ;;  %s310_s1 = smov [#allocation10]  }
  0x28   :  { %v126_v5 = vshrl.u32 %v125_v4, 7  ;;  %v172_v6 = vand.u32 127, %v125_v4  ;;  %s202_s4 = sshll.u32 %s310_s1, 4  ;;  %s203_s4 = int_to_ptr.vmem [resolvable:$true] %s202_s4 }
  0x29   :  { %s277_s5 = scalar_lea.vmem %s203_s4, 16  ;;  %s281_s6 = scalar_lea.vmem %s203_s4, 32 }
  0x2a   :  { %219 = vmatmul.mubr.msk.f32.vlgmr.msra.gmra.mrb[0].mxu0 %vm46_vm2, %v45_v3  ;;  %vm175_vm4 = vcmp.eq.s32.totalorder %v126_v5, %v172_v6  ;;  %v149_v25 = vsub.s32 0, %v126_v5  ;;  %p278_p2 = scmp.ne.s32.totalorder %s203_s4, %s277_s5  ;;  %p282_p3 = scmp.lt.s32.totalorder %s203_s4, %s203_s4 }
  0x2b   :  { %p283_p4 = scmp.lt.s32.totalorder %s281_s6, %s277_s5 }
  0x2d   :  { %v144_v40 = vld [vmem:[#allocation3] sm:$0x1]  ;;  %p284_p5 = por %p283_p4, %p282_p3 }
  0x2e   :  { %v131_v22 = vld [vmem:[#allocation2] sm:$0x1] }
  0x2f   :  { %p285_p6 = pnand %p284_p5, %p278_p2 }
  0xfd   :  { %v119_v7 = vpop.f32.mrb[0].mxu0 }
  0xfe   :  { %v123_v8 = vmul.f32 20.0, %v119_v7  ;;  %v220_v9 = vpop.f32.mrb[1].mxu0 }
 0x100   :  { %v133_v10 = vsel %vm132_vm3, %v123_v8, -inf  ;;  %v176_v11 = vsel %vm175_vm4, %v123_v8, 0.0 }
 0x101   :  { %v134_v12 = vrot.slane %v133_v10, 4  ;;  %v177_v13 = vsel %vm132_vm3, %v176_v11, 0.0 }
 0x102   :  { %v178_v14 = vrot.slane %v177_v13, 4 }
 0x103   :  { %v135_v15 = vmax.f32 %v133_v10, %v134_v12 }
 0x104   :  { %v179_v16 = vadd.f32 %v178_v14, %v177_v13 }
 0x105   :  { %v136_v17 = vrot.slane %v135_v15, 2 }
 0x106   :  { %v180_v18 = vrot.slane %v179_v16, 2 }
 0x107   :  { %v137_v19 = vmax.f32 %v135_v15, %v136_v17 }
 0x108   :  { %v181_v20 = vadd.f32 %v180_v18, %v179_v16 }
 0x109   :  { %v138_v21 = vrot.slane %v137_v19, 1 }
 0x10a   :  { %v182_v23 = vrot.slane %v181_v20, 1 }
 0x10b   :  { %v139_v24 = vmax.f32 %v137_v19, %v138_v21 }
 0x10c   :  { %v183_v26 = vadd.f32 %v182_v23, %v181_v20 }
 0x10d   :  { %v140_v27 = vmax.f32 %v131_v22, %v139_v24 }
 0x10e   :  { %184 = vst.msk [vmem:[#allocation4] sm:$0x1] %vm40_vm0, %v183_v26 }
 0x10f   :  { %v150_v28 = vrot.slane %v140_v27, %v149_v25  ;;  %165 = vst.msk [vmem:[#allocation2] sm:$0x1] %vm40_vm0, %v140_v27  ;;  %v141_v31 = vsub.f32 %v131_v22, %v140_v27 }
 0x111   :  { %v152_v29 = vsub.f32 %v123_v8, %v150_v28  ;;  %v142_v32 = vmul.f32 1.442695, %v141_v31 }
 0x113   :  { %v153_v30 = vmul.f32 1.442695, %v152_v29 }
 0x115   :  { %227 = vpow2.f32 %v153_v30  ;;  %v193_v50 = vld [vmem:[#allocation4] sm:$0x1] }
 0x116   :  { %229 = vpow2.f32 %v142_v32  ;;  %v188_v48 = vld [vmem:[#allocation2] sm:$0x1] }
 0x11f   :  { %v228_v33 = vpop.eup %227 }
 0x120   :  { %v155_v34 = vsel %vm132_vm3, %v228_v33, 0.0  ;;  %v230_v39 = vpop.eup %229 }
 0x121   :  { %v156_v35 = vrot.slane %v155_v34, 4  ;;  %v145_v42 = vmul.f32 %v230_v39, %v144_v40 }
 0x123   :  { %v157_v36 = vadd.f32 %v156_v35, %v155_v34 }
 0x125   :  { %v158_v37 = vrot.slane %v157_v36, 2 }
 0x127   :  { %v159_v38 = vadd.f32 %v158_v37, %v157_v36 }
 0x129   :  { %v160_v41 = vrot.slane %v159_v38, 1 }
 0x12b   :  { %v161_v43 = vadd.f32 %v160_v41, %v159_v38 }
 0x12d   :  { %v162_v44 = vadd.f32 %v161_v43, %v145_v42 }
 0x12f   :  { %164 = vst.msk [vmem:[#allocation3] sm:$0x1] %vm40_vm0, %v162_v44 }
 0x136   :  { %v189_v45 = vld [vmem:[#allocation3] sm:$0x1] }
 0x137   :  { %231 = vlog2.f32 %v189_v45 }
 0x141   :  { %v232_v46 = vpop.eup %231 }
 0x142   :  { %v191_v47 = vmul.f32 0.6931472, %v232_v46 }
 0x144   :  { %v192_v49 = vadd.f32 %v191_v47, %v188_v48 }
 0x146   :  { %v194_v51 = vsub.f32 %v192_v49, %v193_v50 }
 0x148   :  { %195 = vst.msk [vmem:[#allocation10] sm:$0x1] %vm40_vm0, %v194_v51 }
 0x149   :  { %288 = shalt.err (!%p285_p6)
}
 0x14a   :  { %s289_s9 = scalar_lea.hbm %s374_s2, 16 }
 0x14b   :  { %p290_p7 = scmp.ne.s32.totalorder %s374_s2, %s289_s9  ;;  %p293_p8 = scmp.lt.u32.totalorder %s289_s9, %s374_s2 }
 0x14d   :  { %p295_p9 = pnand %p293_p8, %p290_p7 }
 0x14f   :  { %298 = shalt.err (!%p295_p9)
}
 0x150   :  { %205 = dma.vmem_to_hbm [thread:$0]  %s203_s4, 16, %s374_s2, [#allocation7]  }
 0x151   :  { %303 = dma.done.wait [#allocation7], 16  }
 0x152   :  { %304 = vsyncadd [#allocation7], 4294967280 }
 0x153   :  { %209 = vsyncpa [#allocation6], 1 }
 0x154   :  { %210 = vsyncpa [#allocation9], 1 }
 0x155   :  { %211 = vsyncpa [#allocation7], 1 }

</bundles_post_ra>
